<compile_context>
chip_gen: v6e
topology: v6e:2x2x1
jax: 0.10.0
libtpu: 0.0.40
codegen_flags: <defaults>
</compile_context>

<pallas_src>
import jax
import jax.numpy as jnp
from jax.experimental import pallas as pl
from jax.experimental.pallas import tpu as pltpu


_LANES = 128
# Target per-grid-step block size: ~2 MiB amortizes per-step overhead
# (~0.35 us) and gives long DMAs.
_TARGET_BLOCK_BYTES = 2 * 1024 * 1024
# Aim for at least this many grid steps (when the input is big enough) so the
# v7x megacore path can shard work across its 2 TensorCores.
_MIN_GRID_STEPS = 4


def _sublane_multiple(dtype) -> int:
    """Sublane alignment: 8 for 4-byte, 16 for 2-byte, 32 for 1-byte dtypes."""
    itemsize = jnp.dtype(dtype).itemsize
    return max(8, 32 // itemsize)


def _round_up(v: int, m: int) -> int:
    return ((v + m - 1) // m) * m


def _quadder_kernel(x_ref, o_ref):
    v = x_ref[...]
    # clamp(x, min=0) == max(x, 0); NaNs propagate like torch.clamp.
    o_ref[...] = jnp.maximum(v, jnp.zeros((), dtype=v.dtype))


def _relu_2d_pallas(x2d: jax.Array) -> jax.Array:
    """Elementwise max(x, 0) on a (rows, 128) lane-dense slab."""
    rows, lanes = x2d.shape
    itemsize = jnp.dtype(x2d.dtype).itemsize
    sub = _sublane_multiple(x2d.dtype)

    if rows <= sub:
        # Single full-array block (block_shape == array shape is always legal).
        tr = rows
    else:
        # ~2 MiB blocks, capped so moderate inputs still get >= _MIN_GRID_STEPS
        # steps; tile rows always a multiple of the dtype's sublane packing.
        tr_target = max(sub, (_TARGET_BLOCK_BYTES // (lanes * itemsize)) // sub * sub)
        tr = min(tr_target, max(sub, _round_up(pl.cdiv(rows, _MIN_GRID_STEPS), sub)))
    grid = (pl.cdiv(rows, tr),)  # ragged last block; Pallas masks OOB writes

    return pl.pallas_call(
        _quadder_kernel,
        out_shape=jax.ShapeDtypeStruct((rows, lanes), x2d.dtype),
        grid_spec=pltpu.PrefetchScalarGridSpec(
            num_scalar_prefetch=0,
            grid=grid,
            in_specs=[pl.BlockSpec((tr, lanes), lambda i: (i, 0))],
            out_specs=pl.BlockSpec((tr, lanes), lambda i: (i, 0)),
        ),
        compiler_params=pltpu.CompilerParams(
            dimension_semantics=("parallel",),
            vmem_limit_bytes=32 * 1024 * 1024,
        ),
        cost_estimate=pl.CostEstimate(
            flops=0,
            transcendentals=0,
            bytes_accessed=2 * rows * lanes * itemsize,
        ),
    )(x2d)


def quadder_forward(x: jax.Array) -> jax.Array:
    """QuadDer.forward: elementwise clamp(x, min=0) on a tensor of any shape."""
    n = x.size
    if n == 0:
        return x

    x_flat = jnp.reshape(x, (-1,))  # contiguous reshape: no copy
    rem = n % _LANES
    n_main = n - rem

    if n_main == 0:
        # Fewer than 128 elements: a Pallas launch is pure overhead.
        out = jnp.maximum(x_flat, jnp.zeros((), dtype=x.dtype))
        return jnp.reshape(out, x.shape)

    # Lane-aligned prefix streams through the Pallas kernel, no padding copy.
    main2d = jnp.reshape(x_flat[:n_main], (n_main // _LANES, _LANES))
    out_main = jnp.reshape(_relu_2d_pallas(main2d), (-1,))

    if rem == 0:
        return jnp.reshape(out_main, x.shape)

    # Rare path: the < 128-element tail is handled with plain jnp.maximum.
    out_tail = jnp.maximum(x_flat[n_main:], jnp.zeros((), dtype=x.dtype))
    return jnp.reshape(jnp.concatenate([out_main, out_tail]), x.shape)


if __name__ == "__main__":
    key = jax.random.PRNGKey(0)
    k1, k2, k3, k4 = jax.random.split(key, 4)

    tests = [
        # Small NCHW (matches the module's typical use): 16 x 128 slab, 2 steps.
        ("small_f32", jax.random.normal(k1, (2, 4, 16, 16), dtype=jnp.float32)),
        # Same small shape in bf16: exercises the 16-row sublane packing.
        ("small_bf16",
         jax.random.normal(k2, (2, 4, 16, 16), dtype=jnp.float32).astype(jnp.bfloat16)),
        # Odd dims: exercises the ragged last block + the <128-element tail.
        ("ragged", jax.random.normal(k3, (2, 3, 17, 19), dtype=jnp.float32)),
        # Medium NCHW: exercises the multi-step big-block path.
        ("medium", jax.random.normal(k4, (4, 16, 64, 64), dtype=jnp.float32)),
    ]

    fwd = jax.jit(quadder_forward)
    for name, x in tests:
        out = jax.block_until_ready(fwd(x))
        ref = jnp.maximum(x, jnp.zeros((), dtype=x.dtype))
        assert out.shape == x.shape and out.dtype == x.dtype, name
        assert bool(jnp.array_equal(out, ref)), f"mismatch vs reference: {name}"

    print("KERNEL_OK")
</pallas_src>

<mosaic_0001>
module attributes {stable_mosaic.version = 11 : i64} {
  func.func @_quadder_kernel(%arg0: i32, %arg1: memref<8x128xf32, #tpu.memory_space<vmem>>, %arg2: memref<8x128xf32, #tpu.memory_space<vmem>>) attributes {dimension_semantics = [#tpu.dimension_semantics<parallel>], iteration_bounds = array<i64: 2>, scalar_prefetch = 0 : i64, scratch_operands = 0 : i64, tpu.core_type = #tpu.core_type<tc>, window_params = [{transform_indices = @transform_0, window_bounds = array<i64: 8, 128>}, {transform_indices = @transform_1, window_bounds = array<i64: 8, 128>}]} {
    %c0 = arith.constant 0 : index
    %c0_0 = arith.constant 0 : index
    %0 = vector.load %arg1[%c0, %c0_0] : memref<8x128xf32, #tpu.memory_space<vmem>>, vector<8x128xf32>
    %cst = arith.constant 0.000000e+00 : f32
    %1 = vector.broadcast %cst : f32 to vector<8x128xf32>
    %2 = arith.maximumf %0, %1 : vector<8x128xf32>
    %c0_1 = arith.constant 0 : index
    %c0_2 = arith.constant 0 : index
    %3 = vector.load %arg2[%c0_1, %c0_2] : memref<8x128xf32, #tpu.memory_space<vmem>>, vector<8x128xf32>
    tpu.vector_store %arg2[%c0_1, %c0_2], %2 {strides = array<i32>} : memref<8x128xf32, #tpu.memory_space<vmem>>, vector<8x128xf32>,
    return
  }
  func.func @transform_0(%arg0: i32) -> (i32, i32) {
    %c0_i32 = arith.constant 0 : i32
    %c0_i32_0 = arith.constant 0 : i32
    return %arg0, %c0_i32 : i32, i32
  }
  func.func @transform_1(%arg0: i32) -> (i32, i32) {
    %c0_i32 = arith.constant 0 : i32
    %c0_i32_0 = arith.constant 0 : i32
    return %arg0, %c0_i32 : i32, i32
  }
}

</mosaic_0001>

<bundles_post_ra>
// kernel: quadder_forward.1
= control target key start
LH: loop header
LB: loop body
LE: loop exit
PB: predicated region body
PF: predicated region fallthrough
CT: control target
= control target key end

     0   :  { %s189_s6 = smov 0   ;;  %s209_s0 = inlined_call_operand.vmem [shape: f32[16,128], index: 0, kind: input, shape index: {}]   ;;  %s210_s1 = inlined_call_operand.vmem [shape: f32[16,128], index: 1, kind: output, shape index: {}]  }
   0x1 LB: > { %s168_s7 = sadd.s32 4294967295, %s191_s6   ;;  %p172_p0 = scmp.ge.s32.totalorder %s191_s6, 1  ;;  %s191_s6 = sphi %s189_s6, %s11_s6  }
   0x2   : > { %p86_p1 = scmp.lt.s32.totalorder %s191_s6, 3 }
   0x4   : > { %p87_p2 = pnand %p172_p0, %p86_p1 }
   0x5   : > { %p104_p3 = scmp.lt.s32.totalorder (!%p87_p2), %s168_s7, 1 }
   0x6   : > { %90 = sbr.rel (%p87_p2) target bundleno = 18 (0x12), region = 24 }
   0xb   : > { %s212_s7 = smov (!%p104_p3, %s168_s7), 1 }
   0xc   : > { %s173_s8 = sshll.u32 %s212_s7, 3 }
   0xd   : > { %s107_s11 = scalar_lea.vmem %s209_s0, %s173_s8  ;;  %s111_s14 = scalar_lea.vmem %s210_s1, %s173_s8 }
   0xe   : > { %v112_v0 = vld [vmem:[%s107_s11] sm:$0xff] }
   0xf   : > { %v113_v1 = vmax.f32 %v112_v0, 0.0 }
  0x11   : > { %114 = vst [vmem:[%s111_s14] sm:$0xff] %v113_v1 }
  0x12 PF: > { %s11_s6 = sadd.s32 1, %s191_s6  }
  0x13   : > { %p8_p4 = scmp.ge.s32.totalorder %s11_s6, 4  }
  0x15   :  { %10 = sbr.rel (!%p8_p4) target bundleno = 1 (0x1), region = 54 }

</bundles_post_ra>
